<compile_context>
chip_gen: v7x
topology: tpu7x:2x2x1
jax: 0.10.0
libtpu: 0.0.40
codegen_flags: <defaults>
</compile_context>

<pallas_src>
import jax
import jax.numpy as jnp
from jax import lax
from jax.experimental import pallas as pl
from jax.experimental.pallas import tpu as pltpu


def _embed_kernel(ids_ref, table_ref, out_ref):
    # ids_ref:   VMEM (tile_n, 1) int32 -- token ids for this tile
    # table_ref: VMEM (V, D) float32    -- full table, resident (row 0 zeros)
    # out_ref:   VMEM (tile_n, D) float32
    tile_n = out_ref.shape[0]
    V = table_ref.shape[0]

    ids = ids_ref[...]                                # (tile_n, 1) int32
    ids = jnp.clip(ids, 0, V - 1)                     # fused guard, no host pass

    # One-hot on the VPU: iota along the vocab (lane) axis, compare-broadcast.
    vocab = lax.broadcasted_iota(jnp.int32, (tile_n, V), 1)
    onehot = (vocab == ids).astype(table_ref.dtype)   # exact 0.0 / 1.0 in f32

    # Row "gather" as one MXU matmul with f32 accumulation; the store is a
    # full lane-dense (tile_n, D) tile (unmasked vst).
    out_ref[...] = jnp.dot(
        onehot, table_ref[...], preferred_element_type=jnp.float32
    ).astype(out_ref.dtype)


def ingr_embed_forward(sent_ids, table, *, tile_n=1024):
    """sent_ids: (B, S) int32, table: (V, D) float32 -> (B, S, D) float32."""
    B, S = sent_ids.shape
    V, D = table.shape
    N = B * S

    # Large token tiles amortize the ~0.35us per-grid-step overhead; cap at
    # the padded token count so tiny demo batches stay a single step.  For
    # large N this leaves many grid steps so the "parallel" token axis can
    # shard across v7x's two TensorCores.
    tile_n = int(max(8, min(tile_n, pl.next_power_of_2(N))))
    N_pad = pl.cdiv(N, tile_n) * tile_n

    flat_ids = sent_ids.reshape(N).astype(jnp.int32)
    if N_pad != N:
        # Padded tail -> id 0 -> zero row (padding_idx=0); sliced off below.
        flat_ids = jnp.pad(flat_ids, (0, N_pad - N))
    ids_2d = flat_ids.reshape(N_pad, 1)

    out = pl.pallas_call(
        _embed_kernel,
        out_shape=jax.ShapeDtypeStruct((N_pad, D), table.dtype),
        grid=(N_pad // tile_n,),
        in_specs=[
            # Tiny per-tile id block (tile_n * 4 bytes).
            pl.BlockSpec((tile_n, 1), lambda i: (i, 0)),
            # Full table, constant block index -> fetched once, resident.
            # TODO(synk): for vocabularies too large for VMEM, pass the table
            # with memory_space=pl.ANY and gather rows via async-copy DMAs.
            pl.BlockSpec((V, D), lambda i: (0, 0)),
        ],
        out_specs=pl.BlockSpec((tile_n, D), lambda i: (i, 0)),
        compiler_params=pltpu.CompilerParams(
            dimension_semantics=("parallel",),      # token axis -> megacore
            vmem_limit_bytes=32 * 1024 * 1024,      # well under v7x's 64 MiB
        ),
        cost_estimate=pl.CostEstimate(
            flops=2 * N_pad * V * D,
            transcendentals=0,
            bytes_accessed=N_pad * 4 + V * D * 4 + N_pad * D * 4,
        ),
    )(ids_2d, table)

    if N_pad != N:
        out = out[:N]
    return out.reshape(B, S, D)


def make_embedding_table(key, num_ingr, emb_dim):
    """nn.Embedding(num_ingr + 3, emb_dim, padding_idx=0) default init."""
    V = num_ingr + 3
    table = jax.random.normal(key, (V, emb_dim), dtype=jnp.float32)
    table = table.at[0].set(0.0)          # padding_idx=0 -> zero row
    return table


if __name__ == "__main__":
    key = jax.random.PRNGKey(0)
    k_tab, k_ids = jax.random.split(key)

    # Stand-in for len(open('vocab_ingr.txt').read().split('\n')); the file
    # read itself is host I/O, not part of the forward pass.
    num_ingr = 61                    # -> V = num_ingr + 3 = 64
    emb_dim = 128                    # lane-dense embedding dim
    V = num_ingr + 3
    B, S = 2, 8                      # small padded-sentence batch

    table = make_embedding_table(k_tab, num_ingr, emb_dim)

    sent_ids = jax.random.randint(k_ids, (B, S), 0, V, dtype=jnp.int32)
    sent_ids = sent_ids.at[:, -2:].set(0)      # simulate padding at the end

    out = ingr_embed_forward(sent_ids, table)
    out = jax.block_until_ready(out)

    # Reference: plain JAX embedding lookup (exact gather).
    ref = jnp.take(table, sent_ids, axis=0)
    assert out.shape == (B, S, emb_dim)
    # The one-hot path selects exactly one table row per token (a wrong-row
    # bug would show up as O(1) errors).  Depending on the TPU generation the
    # f32 MXU matmul may be evaluated via multiple bf16 passes, so allow a
    # small rounding tolerance on the selected values.
    max_err = float(jnp.max(jnp.abs(out - ref)))
    assert jnp.allclose(out, ref, atol=5e-3, rtol=5e-3), (
        f"mismatch vs reference gather, max|err|={max_err}")
    # Padding rows must be exactly zero (padding_idx=0; zero row x one-hot).
    assert jnp.all(out[:, -2:, :] == 0.0)

    print("KERNEL_OK")
</pallas_src>

<mosaic_0001>
module attributes {stable_mosaic.version = 11 : i64} {
  func.func @_embed_kernel(%arg0: i32, %arg1: memref<16x1xi32, #tpu.memory_space<vmem>>, %arg2: memref<64x128xf32, #tpu.memory_space<vmem>>, %arg3: memref<16x128xf32, #tpu.memory_space<vmem>>) attributes {dimension_semantics = [#tpu.dimension_semantics<parallel>], iteration_bounds = array<i64: 1>, scalar_prefetch = 0 : i64, scratch_operands = 0 : i64, tpu.core_type = #tpu.core_type<tc>, window_params = [{transform_indices = @transform_0, window_bounds = array<i64: 16, 1>}, {pipeline_mode = #tpu.pipeline_mode<synchronous>, transform_indices = @transform_1, window_bounds = array<i64: 64, 128>}, {transform_indices = @transform_2, window_bounds = array<i64: 16, 128>}]} {
    %c0 = arith.constant 0 : index
    %c0_0 = arith.constant 0 : index
    %0 = vector.load %arg1[%c0, %c0_0] : memref<16x1xi32, #tpu.memory_space<vmem>>, vector<16x1xi32>
    %c0_i32 = arith.constant 0 : i32
    %c63_i32 = arith.constant 63 : i32
    %1 = vector.broadcast %c0_i32 : i32 to vector<16x1xi32>
    %2 = arith.maxsi %1, %0 : vector<16x1xi32>
    %3 = vector.broadcast %c63_i32 : i32 to vector<16x1xi32>
    %4 = arith.minsi %3, %2 : vector<16x1xi32>
    %5 = tpu.iota {dimensions = array<i32: 1>} : vector<16x64xi32>
    %6 = vector.broadcast %4 : vector<16x1xi32> to vector<16x64xi32>
    %7 = arith.cmpi eq, %5, %6 : vector<16x64xi32>
    %8 = arith.extui %7 : vector<16x64xi1> to vector<16x64xi32>
    %9 = arith.sitofp %8 : vector<16x64xi32> to vector<16x64xf32>
    %c0_1 = arith.constant 0 : index
    %c0_2 = arith.constant 0 : index
    %10 = vector.load %arg2[%c0_1, %c0_2] : memref<64x128xf32, #tpu.memory_space<vmem>>, vector<64x128xf32>
    %cst = arith.constant dense<0.000000e+00> : vector<16x128xf32>
    %11 = tpu.matmul %9, %10, %cst {dimension_numbers = #tpu.dot_dimension_numbers<[1], [0], [0], [1], [0, 0, 1, 1], [], []>} : vector<16x64xf32>, vector<64x128xf32>, vector<16x128xf32> -> vector<16x128xf32>
    %c0_3 = arith.constant 0 : index
    %c0_4 = arith.constant 0 : index
    %12 = vector.load %arg3[%c0_3, %c0_4] : memref<16x128xf32, #tpu.memory_space<vmem>>, vector<16x128xf32>
    tpu.vector_store %arg3[%c0_3, %c0_4], %11 {strides = array<i32>} : memref<16x128xf32, #tpu.memory_space<vmem>>, vector<16x128xf32>,
    return
  }
  func.func @transform_0(%arg0: i32) -> (i32, i32) {
    %c0_i32 = arith.constant 0 : i32
    %c0_i32_0 = arith.constant 0 : i32
    return %arg0, %c0_i32 : i32, i32
  }
  func.func @transform_1(%arg0: i32) -> (i32, i32) {
    %c0_i32 = arith.constant 0 : i32
    %c0_i32_0 = arith.constant 0 : i32
    %c0_i32_1 = arith.constant 0 : i32
    return %c0_i32, %c0_i32_0 : i32, i32
  }
  func.func @transform_2(%arg0: i32) -> (i32, i32) {
    %c0_i32 = arith.constant 0 : i32
    %c0_i32_0 = arith.constant 0 : i32
    return %arg0, %c0_i32 : i32, i32
  }
}

</mosaic_0001>

<bundles_post_ra>
// kernel: tpu_custom_call.1
= control target key start
LH: loop header
LB: loop body
LE: loop exit
PB: predicated region body
PF: predicated region fallthrough
CT: control target
= control target key end

     0   :  { %7 = vsyncpa [#allocation3], 0  ;;  %s320_s0 = inlined_call_operand.vmem [shape: s32[16,1], index: 0, kind: input, shape index: {}]   ;;  %s321_s1 = inlined_call_operand.hbm [shape: f32[64,128], index: 1, kind: input, shape index: {}]   ;;  %s322_s2 = inlined_call_operand.hbm [shape: f32[16,128], index: 2, kind: output, shape index: {}]  }
   0x1   :  { %8 = vsyncpa [#allocation4], 0  ;;  %s263_s9 = smov [#allocation2]   ;;  %s215_s13 = scalar_lea.hbm %s321_s1, 1024 }
   0x2   :  { %s16_s10 = sshll.u32 %s263_s9, 4  ;;  %p216_p0 = scmp.ne.s32.totalorder %s321_s1, %s215_s13  ;;  %s17_s10 = int_to_ptr.vmem [resolvable:$true] %s16_s10 }
   0x3   :  { %p219_p1 = scmp.lt.u32.totalorder %s215_s13, %s321_s1 }
   0x5   :  { %p221_p2 = pnand %p219_p1, %p216_p0 }
   0x7   :  { %224 = shalt.err (!%p221_p2)
}
   0x8   :  { %s225_s18 = scalar_lea.vmem %s17_s10, 1024  ;;  %p230_p4 = scmp.lt.s32.totalorder %s17_s10, %s17_s10 }
   0x9   :  { %p226_p3 = scmp.ne.s32.totalorder %s17_s10, %s225_s18  ;;  %p231_p5 = scmp.lt.s32.totalorder %s225_s18, %s225_s18 }
   0xb   :  { %p232_p6 = por %p231_p5, %p230_p4 }
   0xd   :  { %p233_p7 = pnand %p232_p6, %p226_p3 }
   0xf   :  { %236 = shalt.err (!%p233_p7)
}
  0x10   :  { %s264_s19 = smov 128   ;;  %s265_s20 = smov 8  }
  0x11   :  { %22 = dma.hbm_to_vmem [thread:$0]  %s321_s1, 1024, %s17_s10, [#allocation3], %s264_s19, %s264_s19, %s265_s20  }
  0x12   :  { %259 = dma.done.wait [#allocation3], 1024  }
  0x13   :  { %260 = vsyncadd [#allocation3], 4294966272  ;;  %v266_v0 = vmov 0   ;;  %v26_v1 = vld [vmem:[%s320_s0] sm:$0xff]  ;;  %v27_v2 = vld [vmem:[%s320_s0 + $0x8] sm:$0xff]  ;;  %v36_v19 = vlaneseq  ;;  %vm58_vm4 = vcmask 523264  }
  0x14   :  { %214 = vset.pattern.permute.xlu0 %v266_v0  ;;  %v50_v3 = vld [vmem:[#allocation2] sm:$0xff]  ;;  %vm28_vm0 = vcmp.gt.s32.totalorder %v26_v1, 0  ;;  %vm30_vm1 = vcmp.gt.s32.totalorder %v27_v2, 0  ;;  %v51_v4 = vld [vmem:[#allocation2 + $0x8] sm:$0xff]  ;;  %v52_v5 = vld [vmem:[#allocation2 + $0x10] sm:$0xff]  ;;  %v267_v22 = vmov 0.0  }
  0x15   :  { %v53_v6 = vld [vmem:[#allocation2 + $0x18] sm:$0xff]  ;;  %v29_v7 = vsel %vm28_vm0, %v26_v1, 0  ;;  %v31_v8 = vsel %vm30_vm1, %v27_v2, 0  ;;  %v192_v9 = vpack.c.bf16 %v51_v4, %v50_v3  ;;  %v54_v11 = vld [vmem:[#allocation2 + $0x20] sm:$0xff]  ;;  %v55_v12 = vld [vmem:[#allocation2 + $0x28] sm:$0xff]  ;;  %v37_v20 = vand.u32 127, %v36_v19 }
  0x16   :  { %v196_v10 = vpack.c.bf16 %v53_v6, %v52_v5  ;;  %vm32_vm2 = vcmp.lt.s32.totalorder %v29_v7, 63  ;;  %vm34_vm3 = vcmp.lt.s32.totalorder %v31_v8, 63  ;;  %v200_v15 = vpack.c.bf16 %v55_v12, %v54_v11  ;;  %v56_v16 = vld [vmem:[#allocation2 + $0x30] sm:$0xff]  ;;  %v57_v17 = vld [vmem:[#allocation2 + $0x38] sm:$0xff]  ;;  %s268_s0 = smov [#allocation5]  }
  0x17   :  { %v33_v13 = vsel %vm32_vm2, %v29_v7, 63  ;;  %193 = vmatprep.subr.bf16.mxu0 %v192_v9  ;;  %v35_v14 = vsel %vm34_vm3, %v31_v8, 63  ;;  %v204_v18 = vpack.c.bf16 %v57_v17, %v56_v16  ;;  %s147_s1 = sshll.u32 %s268_s0, 4  ;;  %s148_s1 = int_to_ptr.vmem [resolvable:$true] %s147_s1 }
  0x18   :  { %39 = vperm.xlu0 %214, %v33_v13   ;;  %195 = vmatpush3.bf16.msra.mxu0 %v192_v9  ;;  %s237_s27 = scalar_lea.vmem %s148_s1, 256  ;;  %p242_p9 = scmp.lt.s32.totalorder %s148_s1, %s148_s1 }
  0x19   :  { %197 = vmatprep.subr.bf16.mxu0 %v196_v10  ;;  %p238_p8 = scmp.ne.s32.totalorder %s148_s1, %s237_s27  ;;  %p243_p10 = scmp.lt.s32.totalorder %s237_s27, %s237_s27 }
  0x1b   :  { %p244_p11 = por %p243_p10, %p242_p9 }
  0x1c   :  { %42 = vperm.xlu0 %214, %v35_v14   ;;  %199 = vmatpush3.bf16.msra.mxu0 %v196_v10 }
  0x1d   :  { %201 = vmatprep.subr.bf16.mxu0 %v200_v15  ;;  %p245_p12 = pnand %p244_p11, %p238_p8 }
  0x20   :  { %203 = vmatpush3.bf16.msra.mxu0 %v200_v15 }
  0x21   :  { %205 = vmatprep.subr.bf16.mxu0 %v204_v18 }
  0x24   :  { %207 = vmatpush3.bf16.msra.mxu0 %v204_v18 }
  0x97   :  { %v40_v21 = vpop.permute.xlu0 %39 }
  0x98   :  { %vm44_vm5 = vcmp.eq.s32.totalorder %v37_v20, %v40_v21 }
  0x99   :  { %v159_v23 = vsel %vm44_vm5, 1.0, %v267_v22 }
  0x9a   :  { %189 = vmatprep.mubr.msk.f32.mxu0 %vm58_vm4, %v159_v23 }
  0x9b   :  { %v43_v24 = vpop.permute.xlu0 %42 }
  0x9c   :  { %vm45_vm6 = vcmp.eq.s32.totalorder %v37_v20, %v43_v24 }
  0x9d   :  { %v160_v25 = vsel %vm45_vm6, 1.0, %v267_v22 }
  0x9e   :  { %190 = vmatmul.mubr.msk.f32.vlgmr.msra.gmra.mrb[0].mxu0 %vm58_vm4, %v160_v25 }
 0x171   :  { %v191_v26 = vpop.f32.mrb[0].mxu0 }
 0x172   :  { %141 = vst [vmem:[#allocation5 + $0x8] sm:$0xff] %v191_v26  ;;  %v131_v27 = vpop.f32.mrb[1].mxu0 }
 0x173   :  { %140 = vst [vmem:[#allocation5] sm:$0xff] %v131_v27 }
 0x174   :  { %248 = shalt.err (!%p245_p12)
}
 0x175   :  { %s249_s30 = scalar_lea.hbm %s322_s2, 256 }
 0x176   :  { %p250_p13 = scmp.ne.s32.totalorder %s322_s2, %s249_s30  ;;  %p253_p0 = scmp.lt.u32.totalorder %s249_s30, %s322_s2 }
 0x178   :  { %p255_p1 = pnand %p253_p0, %p250_p13 }
 0x17a   :  { %258 = shalt.err (!%p255_p1)
}
 0x17b   :  { %153 = dma.vmem_to_hbm [thread:$0]  %s148_s1, 256, %s322_s2, [#allocation4], %s264_s19, %s264_s19, %s265_s20  }
 0x17c   :  { %261 = dma.done.wait [#allocation4], 256  }
 0x17d   :  { %262 = vsyncadd [#allocation4], 4294967040 }
 0x17e   :  { %157 = vsyncpa [#allocation3], 1 }
 0x17f   :  { %158 = vsyncpa [#allocation4], 1 }

</bundles_post_ra>
